<compile_context>
chip_gen: v5e
topology: v5e:2x2
jax: 0.10.0
libtpu: 0.0.40
codegen_flags: <defaults>
</compile_context>

<pallas_src>
import functools

import jax
import jax.numpy as jnp
from jax.experimental import pallas as pl
from jax.experimental.pallas import tpu as pltpu


def _policy_kernel(state_ref, w1_ref, b1_ref, wh_ref, bh_ref, out_ref, *, action_dim):
    # Hidden layer (transposed layout): (H, S) @ (S, TB) -> (H, TB), ReLU.
    x = jnp.dot(w1_ref[...], state_ref[...], preferred_element_type=jnp.float32)
    x = jnp.maximum(x + b1_ref[...], 0.0)

    # Fused heads: (2A, H) @ (H, TB) -> (2A, TB).
    # Rows 0:A = mu head, rows A:2A = std head.
    h = jnp.dot(wh_ref[...], x, preferred_element_type=jnp.float32) + bh_ref[...]

    # Epilogue on the (2A, TB) slab (one vreg per 128 batch lanes): compute
    # both activations and select per sublane-row — pure VPU/EUP work, free
    # against the DMA at these sizes.
    mu_all = 2.0 * jnp.tanh(h)
    # Numerically stable softplus matching torch (linear above threshold 20).
    sp = jnp.log1p(jnp.exp(-jnp.abs(h))) + jnp.maximum(h, 0.0)
    std_all = jnp.where(h > 20.0, h, sp)

    row = jax.lax.broadcasted_iota(jnp.int32, h.shape, dimension=0)
    out_ref[...] = jnp.where(row < action_dim, mu_all, std_all)


def fuse_params(w1, b1, wmu, bmu, wstd, bstd):
    """One-time parameter prep (do this at init, not per call).

    Returns lane-dense, head-fused parameters for the kernel:
      w1_t (H, S), b1_c (H, 1), wh_t (2A, H), bh_c (2A, 1).
    """
    w1_t = jnp.asarray(w1).T                                     # (H, S)
    b1_c = jnp.asarray(b1).reshape(-1, 1)                        # (H, 1)
    wh_t = jnp.concatenate([wmu, wstd], axis=1).T                # (2A, H)
    bh_c = jnp.concatenate([bmu, bstd], axis=1).reshape(-1, 1)   # (2A, 1)
    return w1_t, b1_c, wh_t, bh_c


def policy_continuous_net(state, w1_t, b1_c, wh_t, bh_c, *, tile_b=None):
    """state: (B, state_dim) f32. Fused params from `fuse_params`.

    Returns (mu, std), each (B, action_dim) f32.
    """
    B, S = state.shape
    H = w1_t.shape[0]
    A2 = wh_t.shape[0]
    A = A2 // 2

    # Batch tile (lane axis) must be a multiple of 128. Default: large tiles
    # (overhead-bound kernel) but keep >= 2 grid steps when B allows so the
    # "parallel" axis can use both TensorCores on v7x.
    if tile_b is None:
        tile_b = max(128, min(2048, 128 * pl.cdiv(pl.cdiv(B, 2), 128)))
    else:
        tile_b = max(128, (tile_b // 128) * 128)

    n_tiles = pl.cdiv(B, tile_b)
    Bp = n_tiles * tile_b

    # Put batch on the 128-lane axis: (S, Bp). Pad only if the tile does not
    # divide B (avoided in the common case).
    state_t = state.T
    if Bp != B:
        state_t = jnp.pad(state_t, ((0, 0), (0, Bp - B)))

    out = pl.pallas_call(
        functools.partial(_policy_kernel, action_dim=A),
        out_shape=jax.ShapeDtypeStruct((A2, Bp), jnp.float32),
        grid=(n_tiles,),
        in_specs=[
            pl.BlockSpec((S, tile_b), lambda i: (0, i)),   # state: batch-tiled, lane-dense
            pl.BlockSpec((H, S), lambda i: (0, 0)),        # W1^T: resident
            pl.BlockSpec((H, 1), lambda i: (0, 0)),        # b1 column: resident
            pl.BlockSpec((A2, H), lambda i: (0, 0)),       # fused head W^T: resident
            pl.BlockSpec((A2, 1), lambda i: (0, 0)),       # fused head b column: resident
        ],
        out_specs=pl.BlockSpec((A2, tile_b), lambda i: (0, i)),
        compiler_params=pltpu.CompilerParams(
            dimension_semantics=("parallel",),
        ),
        cost_estimate=pl.CostEstimate(
            flops=2 * Bp * (S * H + H * A2),
            transcendentals=3 * Bp * A2,
            bytes_accessed=4 * (S * Bp + H * S + H + A2 * H + A2 + A2 * Bp),
        ),
    )(state_t, w1_t, b1_c, wh_t, bh_c)

    # Split rows (mu | std) and restore (B, A) orientation.
    mu = out[:A, :B].T
    std = out[A:, :B].T
    return mu, std


def init_params(key, state_dim, hidden_dim, action_dim):
    """Deterministic synthetic init (uniform, torch-Linear-like fan_in bound).

    Weights are stored as (in_features, out_features) like `x @ W + b`.
    """
    ks = jax.random.split(key, 6)

    def linear(kw, kb, fan_in, fan_out):
        bound = 1.0 / jnp.sqrt(fan_in)
        w = jax.random.uniform(kw, (fan_in, fan_out), jnp.float32, -bound, bound)
        b = jax.random.uniform(kb, (1, fan_out), jnp.float32, -bound, bound)
        return w, b

    w1, b1 = linear(ks[0], ks[1], state_dim, hidden_dim)
    wmu, bmu = linear(ks[2], ks[3], hidden_dim, action_dim)
    wstd, bstd = linear(ks[4], ks[5], hidden_dim, action_dim)
    return w1, b1, wmu, bmu, wstd, bstd


if __name__ == "__main__":
    state_dim, hidden_dim, action_dim = 8, 32, 4
    batch = 256  # divides the 128-row batch tile -> no padding, 2 grid steps

    key = jax.random.PRNGKey(0)
    k_state, k_params = jax.random.split(key)
    state = jax.random.normal(k_state, (batch, state_dim), jnp.float32)
    params = init_params(k_params, state_dim, hidden_dim, action_dim)

    # One-time parameter fusion (outside the hot path), jitted per-call wrapper.
    fused = fuse_params(*params)
    fwd = jax.jit(policy_continuous_net)

    mu, std = fwd(state, *fused)
    jax.block_until_ready((mu, std))

    # Pure-JAX reference check of the same math.
    w1, b1, wmu, bmu, wstd, bstd = params
    x_ref = jnp.maximum(state @ w1 + b1, 0.0)
    mu_ref = 2.0 * jnp.tanh(x_ref @ wmu + bmu)
    std_ref = jax.nn.softplus(x_ref @ wstd + bstd)
    assert mu.shape == (batch, action_dim) and std.shape == (batch, action_dim)
    assert jnp.allclose(mu, mu_ref, atol=1e-5), "mu mismatch"
    assert jnp.allclose(std, std_ref, atol=1e-5), "std mismatch"

    print("KERNEL_OK")
</pallas_src>

<mosaic_0001>
module attributes {stable_mosaic.version = 11 : i64} {
  func.func @_policy_kernel(%arg0: i32, %arg1: memref<8x128xf32, #tpu.memory_space<vmem>>, %arg2: memref<32x8xf32, #tpu.memory_space<vmem>>, %arg3: memref<32x1xf32, #tpu.memory_space<vmem>>, %arg4: memref<8x32xf32, #tpu.memory_space<vmem>>, %arg5: memref<8x1xf32, #tpu.memory_space<vmem>>, %arg6: memref<8x128xf32, #tpu.memory_space<vmem>>) attributes {dimension_semantics = [#tpu.dimension_semantics<parallel>], iteration_bounds = array<i64: 2>, scalar_prefetch = 0 : i64, scratch_operands = 0 : i64, tpu.core_type = #tpu.core_type<tc>, window_params = [{transform_indices = @transform_0, window_bounds = array<i64: 8, 128>}, {pipeline_mode = #tpu.pipeline_mode<synchronous>, transform_indices = @transform_1, window_bounds = array<i64: 32, 8>}, {pipeline_mode = #tpu.pipeline_mode<synchronous>, transform_indices = @transform_2, window_bounds = array<i64: 32, 1>}, {pipeline_mode = #tpu.pipeline_mode<synchronous>, transform_indices = @transform_3, window_bounds = array<i64: 8, 32>}, {pipeline_mode = #tpu.pipeline_mode<synchronous>, transform_indices = @transform_4, window_bounds = array<i64: 8, 1>}, {transform_indices = @transform_5, window_bounds = array<i64: 8, 128>}]} {
    %c0 = arith.constant 0 : index
    %c0_0 = arith.constant 0 : index
    %0 = vector.load %arg2[%c0, %c0_0] : memref<32x8xf32, #tpu.memory_space<vmem>>, vector<32x8xf32>
    %c0_1 = arith.constant 0 : index
    %c0_2 = arith.constant 0 : index
    %1 = vector.load %arg1[%c0_1, %c0_2] : memref<8x128xf32, #tpu.memory_space<vmem>>, vector<8x128xf32>
    %cst = arith.constant dense<0.000000e+00> : vector<32x128xf32>
    %2 = tpu.matmul %0, %1, %cst {dimension_numbers = #tpu.dot_dimension_numbers<[1], [0], [0], [1], [0, 0, 1, 1], [], []>} : vector<32x8xf32>, vector<8x128xf32>, vector<32x128xf32> -> vector<32x128xf32>
    %c0_3 = arith.constant 0 : index
    %c0_4 = arith.constant 0 : index
    %3 = vector.load %arg3[%c0_3, %c0_4] : memref<32x1xf32, #tpu.memory_space<vmem>>, vector<32x1xf32>
    %4 = vector.broadcast %3 : vector<32x1xf32> to vector<32x128xf32>
    %5 = arith.addf %2, %4 : vector<32x128xf32>
    %cst_5 = arith.constant 0.000000e+00 : f32
    %6 = vector.broadcast %cst_5 : f32 to vector<32x128xf32>
    %7 = arith.maximumf %5, %6 : vector<32x128xf32>
    %c0_6 = arith.constant 0 : index
    %c0_7 = arith.constant 0 : index
    %8 = vector.load %arg4[%c0_6, %c0_7] : memref<8x32xf32, #tpu.memory_space<vmem>>, vector<8x32xf32>
    %cst_8 = arith.constant dense<0.000000e+00> : vector<8x128xf32>
    %9 = tpu.matmul %8, %7, %cst_8 {dimension_numbers = #tpu.dot_dimension_numbers<[1], [0], [0], [1], [0, 0, 1, 1], [], []>} : vector<8x32xf32>, vector<32x128xf32>, vector<8x128xf32> -> vector<8x128xf32>
    %c0_9 = arith.constant 0 : index
    %c0_10 = arith.constant 0 : index
    %10 = vector.load %arg5[%c0_9, %c0_10] : memref<8x1xf32, #tpu.memory_space<vmem>>, vector<8x1xf32>
    %11 = vector.broadcast %10 : vector<8x1xf32> to vector<8x128xf32>
    %12 = arith.addf %9, %11 : vector<8x128xf32>
    %13 = math.tanh %12 : vector<8x128xf32>
    %cst_11 = arith.constant 2.000000e+00 : f32
    %14 = vector.broadcast %cst_11 : f32 to vector<8x128xf32>
    %15 = arith.mulf %14, %13 : vector<8x128xf32>
    %16 = math.absf %12 : vector<8x128xf32>
    %cst_12 = arith.constant 0.000000e+00 : f32
    %17 = vector.broadcast %cst_12 : f32 to vector<8x128xf32>
    %18 = arith.subf %17, %16 : vector<8x128xf32>
    %19 = math.exp %18 : vector<8x128xf32>
    %20 = math.log1p %19 : vector<8x128xf32>
    %cst_13 = arith.constant 0.000000e+00 : f32
    %21 = vector.broadcast %cst_13 : f32 to vector<8x128xf32>
    %22 = arith.maximumf %12, %21 : vector<8x128xf32>
    %23 = arith.addf %20, %22 : vector<8x128xf32>
    %cst_14 = arith.constant 2.000000e+01 : f32
    %24 = vector.broadcast %cst_14 : f32 to vector<8x128xf32>
    %25 = arith.cmpf ogt, %12, %24 : vector<8x128xf32>
    %26 = arith.select %25, %12, %23 : vector<8x128xi1>, vector<8x128xf32>
    %27 = tpu.iota {dimensions = array<i32: 0>} : vector<8x128xi32>
    %c4_i32 = arith.constant 4 : i32
    %28 = vector.broadcast %c4_i32 : i32 to vector<8x128xi32>
    %29 = arith.cmpi slt, %27, %28 : vector<8x128xi32>
    %30 = arith.select %29, %15, %26 : vector<8x128xi1>, vector<8x128xf32>
    %c0_15 = arith.constant 0 : index
    %c0_16 = arith.constant 0 : index
    %31 = vector.load %arg6[%c0_15, %c0_16] : memref<8x128xf32, #tpu.memory_space<vmem>>, vector<8x128xf32>
    tpu.vector_store %arg6[%c0_15, %c0_16], %30 {strides = array<i32>} : memref<8x128xf32, #tpu.memory_space<vmem>>, vector<8x128xf32>,
    return
  }
  func.func @transform_0(%arg0: i32) -> (i32, i32) {
    %c0_i32 = arith.constant 0 : i32
    %c0_i32_0 = arith.constant 0 : i32
    return %c0_i32, %arg0 : i32, i32
  }
  func.func @transform_1(%arg0: i32) -> (i32, i32) {
    %c0_i32 = arith.constant 0 : i32
    %c0_i32_0 = arith.constant 0 : i32
    %c0_i32_1 = arith.constant 0 : i32
    return %c0_i32, %c0_i32_0 : i32, i32
  }
  func.func @transform_2(%arg0: i32) -> (i32, i32) {
    %c0_i32 = arith.constant 0 : i32
    %c0_i32_0 = arith.constant 0 : i32
    %c0_i32_1 = arith.constant 0 : i32
    return %c0_i32, %c0_i32_0 : i32, i32
  }
  func.func @transform_3(%arg0: i32) -> (i32, i32) {
    %c0_i32 = arith.constant 0 : i32
    %c0_i32_0 = arith.constant 0 : i32
    %c0_i32_1 = arith.constant 0 : i32
    return %c0_i32, %c0_i32_0 : i32, i32
  }
  func.func @transform_4(%arg0: i32) -> (i32, i32) {
    %c0_i32 = arith.constant 0 : i32
    %c0_i32_0 = arith.constant 0 : i32
    %c0_i32_1 = arith.constant 0 : i32
    return %c0_i32, %c0_i32_0 : i32, i32
  }
  func.func @transform_5(%arg0: i32) -> (i32, i32) {
    %c0_i32 = arith.constant 0 : i32
    %c0_i32_0 = arith.constant 0 : i32
    return %c0_i32, %arg0 : i32, i32
  }
}

</mosaic_0001>

<bundles_post_ra>
// kernel: policy_continuous_net.1
= control target key start
LH: loop header
LB: loop body
LE: loop exit
PB: predicated region body
PF: predicated region fallthrough
CT: control target
= control target key end

     0   :  { %s476_s18 = smov 0   ;;  %s530_s0 = inlined_call_operand.vmem [shape: f32[8,256], index: 0, kind: input, shape index: {}]   ;;  %s531_s1 = inlined_call_operand.vmem [shape: f32[32,8], index: 1, kind: input, shape index: {}]   ;;  %s532_s2 = inlined_call_operand.vmem [shape: f32[32,1], index: 2, kind: input, shape index: {}]   ;;  %s533_s3 = inlined_call_operand.vmem [shape: f32[8,32], index: 3, kind: input, shape index: {}]   ;;  %s534_s4 = inlined_call_operand.vmem [shape: f32[8,1], index: 4, kind: input, shape index: {}]   ;;  %s535_s5 = inlined_call_operand.vmem [shape: f32[8,256], index: 5, kind: output, shape index: {}]  }
   0x1 LB: > { %s403_s19 = sadd.s32 4294967295, %s443_s18   ;;  %p407_p0 = scmp.ge.s32.totalorder %s443_s18, 1  ;;  %s443_s18 = sphi %s476_s18, %s15_s18  }
   0x2   : > { %p186_p1 = scmp.lt.s32.totalorder %s443_s18, 3 }
   0x4   : > { %p187_p2 = pnand %p407_p0, %p186_p1 }
   0x5   : > { %p212_p3 = scmp.lt.s32.totalorder (!%p187_p2), %s403_s19, 1 }
   0x6   : > { %190 = sbr.rel (%p187_p2) target bundleno = 323 (0x143), region = 40 }
   0xb   : > { %v445_v0 = vmov 0   ;;  %v228_v1 = vld [vmem:[%s532_s2 + $0x18] sm:$0xff]  ;;  %v226_v2 = vld [vmem:[%s532_s2 + $0x8] sm:$0xff]  ;;  %s537_s19 = smov (!%p212_p3, %s403_s19), 1  ;;  %vm249_vm0 = vcmask 64512   ;;  %v220_v6 = vld [vmem:[%s531_s1] sm:$0xff]  ;;  %v345_v37 = vlaneseq }
   0xc   : > { %428 = vset.pattern.permute.xlu0 %v445_v0  ;;  %429 = vset.pattern.permute.xlu1 %v445_v0  ;;  %s408_s24 = sshll.u32 %s537_s19, 3  ;;  %v221_v3 = vld [vmem:[%s531_s1 + $0x8] sm:$0xff]  ;;  %v223_v4 = vld [vmem:[%s531_s1 + $0x18] sm:$0xff]  ;;  %v227_v7 = vld [vmem:[%s532_s2 + $0x10] sm:$0xff]  ;;  %vm302_vm1 = vcmask 261120  }
   0xd   : > { %246 = vperm.xlu0 %428, %v228_v1   ;;  %236 = vperm.xlu1 %429, %v226_v2   ;;  %s215_s27 = scalar_lea.vmem %s530_s0, %s408_s24  ;;  %v225_v8 = vld [vmem:[%s532_s2] sm:$0xff]  ;;  %v222_v9 = vld [vmem:[%s531_s1 + $0x10] sm:$0xff]  ;;  %v346_v41 = vshrl.u32 %v345_v37, 7  ;;  %s219_s23 = scalar_lea.vmem %s535_s5, %s408_s24 }
   0xe   : > { %430 = vset.pattern.permute.xlu2 %v445_v0  ;;  %v224_v5 = vld [vmem:[%s215_s27] sm:$0xff] }
   0xf   : > { %417 = vmatpush.msra.mxu2 %v224_v5  ;;  %418 = vmatpush.msra.mxu3 %v224_v5  ;;  %v296_v10 = vld [vmem:[%s534_s4] sm:$0xff]  ;;  %vm347_vm3 = vcmp.lt.s32.totalorder %v346_v41, 4 }
  0x10   : > { %411 = vmatmul.msk.f32.vlgmr.msra.gmra.mxu2 %vm249_vm0, %v221_v3  ;;  %413 = vmatmul.msk.f32.vlgmr.msra.gmra.mxu3 %vm249_vm0, %v223_v4  ;;  %v295_v27 = vld [vmem:[%s533_s3] sm:$0xff] }
  0x11   : > { %277 = vmatpush.msra.mxu0 %v224_v5  ;;  %299 = vperm.xlu2 %430, %v296_v10  }
  0x12   : > { %410 = vmatmul.msk.f32.vlgmr.msra.gmra.mxu0 %vm249_vm0, %v220_v6 }
  0x15   : > { %241 = vperm.xlu0 %428, %v227_v7   ;;  %231 = vperm.xlu1 %429, %v225_v8  }
  0x18   : > { %412 = vmatmul.msk.f32.gmra.mxu2 %vm249_vm0, %v222_v9 }
  0x6b   : > { %v300_v28 = vpop.permute.xlu2 %299 }
  0x7f   : > { %v247_v11 = vpop.permute.xlu0 %246  ;;  %v237_v12 = vpop.permute.xlu1 %236 }
  0x87   : > { %v242_v17 = vpop.permute.xlu0 %241  ;;  %v232_v18 = vpop.permute.xlu1 %231 }
  0x8f   : > { %v279_v19 = vpop.f32.mrf.mxu0 }
  0x90   : > { %v280_v23 = vadd.f32 %v279_v19, %v232_v18 }
  0x92   : > { %v291_v26 = vmax.f32 %v280_v23, 0.0 }
  0x93   : > { %v282_v13 = vpop.f32.mrf.mxu2  ;;  %v288_v14 = vpop.f32.mrf.mxu3 }
  0x94   : > { %v289_v15 = vadd.f32 %v288_v14, %v247_v11  ;;  %v283_v21 = vadd.f32 %v282_v13, %v237_v12 }
  0x96   : > { %v294_v16 = vmax.f32 %v289_v15, 0.0  ;;  %v292_v25 = vmax.f32 %v283_v21, 0.0 }
  0x98   : > { %318 = vmatpush.msra.mxu1 %v294_v16 }
  0x9b   : > { %v285_v20 = vpop.f32.mrf.mxu2 }
  0x9c   : > { %v286_v22 = vadd.f32 %v285_v20, %v242_v17 }
  0x9e   : > { %v293_v24 = vmax.f32 %v286_v22, 0.0 }
  0xa0   : > { %319 = vmatpush.msra.mxu1 %v293_v24 }
  0xa2   : > { %320 = vmatpush.msra.mxu1 %v292_v25 }
  0xa4   : > { %321 = vmatpush.msra.mxu1 %v291_v26 }
  0xa5   : > { %414 = vmatmul.msk.f32.vlgmr.msra.gmra.mxu1 %vm302_vm1, %v295_v27 }
 0x122   : > { %v323_v29 = vpop.f32.mrf.mxu1 }
 0x123   : > { %v324_v30 = vadd.f32 %v323_v29, %v300_v28 }
 0x125   : > { %v328_v31 = vand.u32 2147483647, %v324_v30  ;;  %v341_v45 = vmax.f32 %v324_v30, 0.0  ;;  %vm343_vm4 = vcmp.gt.f32.partialorder %v324_v30, 20.0 }
 0x127   : > { %v329_v32 = vsub.f32 0.0, %v328_v31 }
 0x129   : > { %v330_v33 = vmul.f32 1.442695, %v329_v32 }
 0x12b   : > { %431 = vpow2.f32 %v330_v33 }
 0x131   : > { %v432_v34 = vpop.eup %431 }
 0x132   : > { %v332_v35 = vadd.f32 1.0, %v432_v34  ;;  %v335_v36 = vmul.f32 -0.5, %v432_v34  ;;  %v338_v39 = vand.u32 2147483647, %v432_v34 }
 0x134   : > { %433 = vlog2.f32 %v332_v35  ;;  %v336_v38 = vadd.f32 1.0, %v335_v36  ;;  %vm339_vm2 = vcmp.lt.f32.partialorder %v338_v39, 0.0004427343 }
 0x135   : > { %435 = vtanh.f32 %v324_v30 }
 0x136   : > { %v337_v43 = vmul.f32 %v432_v34, %v336_v38 }
 0x13a   : > { %v434_v40 = vpop.eup %433 }
 0x13b   : > { %v334_v42 = vmul.f32 0.6931472, %v434_v40  ;;  %v436_v44 = vpop.eup %435 }
 0x13c   : > { %v327_v48 = vmul.f32 2.0, %v436_v44 }
 0x13d   : > { %v340_v46 = vsel %vm339_vm2, %v337_v43, %v334_v42 }
 0x13e   : > { %v342_v47 = vadd.f32 %v341_v45, %v340_v46 }
 0x140   : > { %v344_v49 = vsel %vm343_vm4, %v324_v30, %v342_v47 }
 0x141   : > { %v348_v50 = vsel %vm347_vm3, %v327_v48, %v344_v49 }
 0x142   : > { %349 = vst [vmem:[%s219_s23] sm:$0xff] %v348_v50 }
 0x143 PF: > { %s15_s18 = sadd.s32 1, %s443_s18  }
 0x144   : > { %p12_p4 = scmp.ge.s32.totalorder %s15_s18, 4  }
 0x146   :  { %14 = sbr.rel (!%p12_p4) target bundleno = 1 (0x1), region = 70 }

</bundles_post_ra>
